<compile_context>
chip_gen: v5e
topology: v5e:2x2
jax: 0.10.0
libtpu: 0.0.40
codegen_flags: <defaults>
</compile_context>

<pallas_src>
import functools

import jax
import jax.numpy as jnp
from jax.experimental import pallas as pl
from jax.experimental.pallas import tpu as pltpu

EPS = 1e-6  # LayerNormalization eps


# --------------------------------------------------------------------------- #
# Tiling helpers
# --------------------------------------------------------------------------- #
def _row_tile(n_rows: int, row_bytes: int, budget: int = 1 << 21) -> int:
    """Row tile: full extent if small, else a multiple of 8 within `budget` bytes.

    ~1-2 MiB blocks are the measured HBM-roofline sweet spot and keep the
    double-buffered working set under the 16/32 MiB default scoped-VMEM limits
    on v5e / v6e / v7x without needing vmem_limit_bytes overrides.
    """
    tm = max(8, min(512, (budget // max(int(row_bytes), 1)) // 8 * 8))
    return n_rows if n_rows <= tm else tm


def _lane_dense_shape(total: int, max_cols: int = 1024):
    """Factor a flat element count into (rows, cols) with cols a multiple of 128."""
    if total % 128 != 0:
        return None
    cols = 128
    while cols * 2 <= max_cols and total % (cols * 2) == 0:
        cols *= 2
    return total // cols, cols


# --------------------------------------------------------------------------- #
# LayerNorm kernel (row-tiled over flattened (B*S, D))
# --------------------------------------------------------------------------- #
def _layernorm_kernel(x_ref, gamma_ref, beta_ref, o_ref):
    x = x_ref[...].astype(jnp.float32)                 # (tm, D)
    d = x.shape[-1]
    mean = jnp.mean(x, axis=-1, keepdims=True)
    # torch.Tensor.std() default: unbiased estimator (ddof=1)
    var = jnp.sum((x - mean) ** 2, axis=-1, keepdims=True) / (d - 1)
    std = jnp.sqrt(var)
    y = gamma_ref[...] * (x - mean) / (std + EPS) + beta_ref[...]
    o_ref[...] = y.astype(o_ref.dtype)


def layernorm(x, gamma, beta):
    orig_shape = x.shape
    D = orig_shape[-1]
    N = x.size // D
    x2 = x.reshape(N, D)
    gamma2 = gamma.reshape(1, D).astype(jnp.float32)
    beta2 = beta.reshape(1, D).astype(jnp.float32)

    tm = _row_tile(N, D * 4)
    grid = (pl.cdiv(N, tm),)
    row_spec = pl.BlockSpec((tm, D), lambda i: (i, 0))
    vec_spec = pl.BlockSpec((1, D), lambda i: (0, 0))

    out = pl.pallas_call(
        _layernorm_kernel,
        out_shape=jax.ShapeDtypeStruct((N, D), x.dtype),
        grid=grid,
        in_specs=[row_spec, vec_spec, vec_spec],
        out_specs=row_spec,
        compiler_params=pltpu.CompilerParams(dimension_semantics=("parallel",)),
    )(x2, gamma2, beta2)
    return out.reshape(orig_shape)


# --------------------------------------------------------------------------- #
# Dropout + residual-add kernels (lane-dense, elementwise)
# --------------------------------------------------------------------------- #
def _residual_add_kernel(x_ref, y_ref, o_ref):
    o_ref[...] = x_ref[...] + y_ref[...]


def _residual_dropout_kernel(x_ref, y_ref, bits_ref, o_ref, *, threshold, scale):
    # Integer-threshold dropout: keep iff bits >= round(rate * 2^32).
    # Elementwise math stays in the input dtype (bf16-native on v6e/v7x).
    x = x_ref[...]
    y = y_ref[...]
    keep = bits_ref[...] >= jnp.uint32(threshold)
    y = jnp.where(keep, y * jnp.asarray(scale, y.dtype), jnp.zeros_like(y))
    o_ref[...] = x + y


def residual_dropout_add(x, y, *, rate, key=None):
    orig_shape = x.shape
    dtype = x.dtype
    y = y.astype(dtype)

    total = x.size
    shp = _lane_dense_shape(total)
    if shp is None:                       # fall back: keep the model dim last
        shp = (total // orig_shape[-1], orig_shape[-1])
    rows, cols = shp
    x2 = x.reshape(rows, cols)
    y2 = y.reshape(rows, cols)

    tr = _row_tile(rows, cols * 4, budget=1 << 20)
    grid = (pl.cdiv(rows, tr),)
    spec = pl.BlockSpec((tr, cols), lambda i: (i, 0))

    common = dict(
        out_shape=jax.ShapeDtypeStruct((rows, cols), dtype),
        grid=grid,
        out_specs=spec,
        compiler_params=pltpu.CompilerParams(dimension_semantics=("parallel",)),
        input_output_aliases={0: 0},      # residual add overwrites x in place
    )

    use_dropout = (rate > 0.0) and (key is not None)
    if use_dropout:
        bits = jax.random.bits(key, (rows, cols), dtype=jnp.uint32)
        threshold = min(int(round(rate * (1 << 32))), (1 << 32) - 1)
        scale = 1.0 / (1.0 - rate)
        kernel = functools.partial(
            _residual_dropout_kernel, threshold=threshold, scale=scale)
        out = pl.pallas_call(kernel, in_specs=[spec, spec, spec], **common)(
            x2, y2, bits)
    else:
        out = pl.pallas_call(
            _residual_add_kernel, in_specs=[spec, spec], **common)(x2, y2)
    return out.reshape(orig_shape)


# --------------------------------------------------------------------------- #
# Fused LN -> Linear -> dropout -> residual-add kernel (single HBM round trip)
# --------------------------------------------------------------------------- #
def _fused_kernel(*refs, threshold, scale, training):
    if training:
        x_ref, g_ref, be_ref, w_ref, b_ref, bits_ref, o_ref = refs
    else:
        x_ref, g_ref, be_ref, w_ref, b_ref, o_ref = refs
        bits_ref = None

    x = x_ref[...].astype(jnp.float32)                 # (tm, D)
    d = x.shape[-1]
    mean = jnp.mean(x, axis=-1, keepdims=True)
    var = jnp.sum((x - mean) ** 2, axis=-1, keepdims=True) / (d - 1)
    std = jnp.sqrt(var)
    n = g_ref[...] * (x - mean) / (std + EPS) + be_ref[...]

    # MXU matmul for the Linear sublayer, f32 accumulation.
    y = jnp.dot(n, w_ref[...].astype(jnp.float32),
                precision=jax.lax.Precision.HIGHEST,
                preferred_element_type=jnp.float32) + b_ref[...]

    if training:
        keep = bits_ref[...] >= jnp.uint32(threshold)
        y = jnp.where(keep, y * scale, jnp.zeros_like(y))

    o_ref[...] = (x + y).astype(o_ref.dtype)


def fused_residual_linear(x, gamma, beta, W, b, *, rate, key=None):
    orig_shape = x.shape
    D = orig_shape[-1]
    assert W.shape == (D, D) and b.shape == (D,)
    N = x.size // D
    x2 = x.reshape(N, D)
    gamma2 = gamma.reshape(1, D).astype(jnp.float32)
    beta2 = beta.reshape(1, D).astype(jnp.float32)
    W2 = W.astype(jnp.float32)
    b2 = b.reshape(1, D).astype(jnp.float32)

    # TODO(synk): for large D, W should be K-tiled with a VMEM accumulator
    # instead of being kept fully resident per grid step.
    tm = _row_tile(N, D * 4, budget=1 << 20)
    grid = (pl.cdiv(N, tm),)
    row_spec = pl.BlockSpec((tm, D), lambda i: (i, 0))
    vec_spec = pl.BlockSpec((1, D), lambda i: (0, 0))
    w_spec = pl.BlockSpec((D, D), lambda i: (0, 0))

    training = (rate > 0.0) and (key is not None)
    in_specs = [row_spec, vec_spec, vec_spec, w_spec, vec_spec]
    args = [x2, gamma2, beta2, W2, b2]
    threshold, scale = 0, 1.0
    if training:
        bits = jax.random.bits(key, (N, D), dtype=jnp.uint32)
        threshold = min(int(round(rate * (1 << 32))), (1 << 32) - 1)
        scale = 1.0 / (1.0 - rate)
        in_specs.append(row_spec)
        args.append(bits)

    kernel = functools.partial(
        _fused_kernel, threshold=threshold, scale=scale, training=training)
    out = pl.pallas_call(
        kernel,
        out_shape=jax.ShapeDtypeStruct((N, D), x.dtype),
        grid=grid,
        in_specs=in_specs,
        out_specs=row_spec,
        compiler_params=pltpu.CompilerParams(dimension_semantics=("parallel",)),
        input_output_aliases={0: 0},
    )(*args)
    return out.reshape(orig_shape)


# --------------------------------------------------------------------------- #
# Module wrapper
# --------------------------------------------------------------------------- #
class ResidualConnection:
    """x + dropout(sublayer(LayerNorm(x))) — pre-norm residual connection."""

    def __init__(self, features: int, dropout: float):
        self.features = features
        self.rate = float(dropout)
        self.alpha = jnp.ones((features,), jnp.float32)   # LN scale (gamma)
        self.bias = jnp.zeros((features,), jnp.float32)   # LN shift (beta)

    def __call__(self, x, sublayer, *, key=None, training: bool = True):
        """Generic path: arbitrary sublayer callable stays in plain JAX."""
        normed = layernorm(x, self.alpha, self.bias)
        y = sublayer(normed)
        rate = self.rate if training else 0.0
        return residual_dropout_add(x, y, rate=rate, key=key)

    def fused_linear(self, x, W, b, *, key=None, training: bool = True):
        """Fused path for a Linear(D, D) sublayer: one pallas_call end to end."""
        rate = self.rate if training else 0.0
        return fused_residual_linear(x, self.alpha, self.bias, W, b,
                                     rate=rate, key=key)


# --------------------------------------------------------------------------- #
# Demo / smoke test
# --------------------------------------------------------------------------- #
if __name__ == "__main__":
    B, S, D = 2, 8, 32
    key = jax.random.PRNGKey(0)
    kx, kw, kb, kdrop = jax.random.split(key, 4)

    x = jax.random.normal(kx, (B, S, D), dtype=jnp.float32)

    # Deterministic example sublayer: Linear(D, D)
    W = jax.random.normal(kw, (D, D), dtype=jnp.float32) * 0.05
    b = jax.random.normal(kb, (D,), dtype=jnp.float32) * 0.05
    sublayer = lambda h: jnp.dot(h, W, precision=jax.lax.Precision.HIGHEST) + b

    block = ResidualConnection(features=D, dropout=0.1)

    # Pure-JAX reference (eval mode)
    def ref_forward(xx):
        mean = xx.mean(-1, keepdims=True)
        var = jnp.sum((xx - mean) ** 2, -1, keepdims=True) / (D - 1)
        std = jnp.sqrt(var)
        n = block.alpha * (xx - mean) / (std + EPS) + block.bias
        return xx + sublayer(n)

    ref = ref_forward(x)

    # Jitted entry points (lets XLA resolve the in-place output aliasing safely)
    gen_eval = jax.jit(lambda xx: block(xx, sublayer, training=False))
    gen_train = jax.jit(lambda xx, k: block(xx, sublayer, key=k, training=True))
    fus_eval = jax.jit(lambda xx: block.fused_linear(xx, W, b, training=False))
    fus_train = jax.jit(lambda xx, k: block.fused_linear(xx, W, b, key=k,
                                                         training=True))

    # 1) eval mode, generic (LN kernel + JAX sublayer + residual kernel)
    out_eval = jax.block_until_ready(gen_eval(x))
    assert out_eval.shape == (B, S, D)
    assert jnp.allclose(out_eval, ref, atol=1e-5, rtol=1e-5), "generic eval mismatch"

    # 2) eval mode, fused single-kernel path
    out_fused = jax.block_until_ready(fus_eval(x))
    assert out_fused.shape == (B, S, D)
    assert jnp.allclose(out_fused, ref, atol=5e-3, rtol=5e-3), "fused eval mismatch"

    # 3) training mode (integer-threshold dropout), both paths
    out_train = jax.block_until_ready(gen_train(x, kdrop))
    out_train_f = jax.block_until_ready(fus_train(x, kdrop))
    assert out_train.shape == (B, S, D) and out_train_f.shape == (B, S, D)
    assert bool(jnp.all(jnp.isfinite(out_train)))
    assert bool(jnp.all(jnp.isfinite(out_train_f)))
    # Dropped positions leave x unchanged; with rate=0.1 over 512 elements the
    # observed drop fraction must be strictly between 0 and 0.5.
    drop_frac = float(jnp.mean((out_train == x).astype(jnp.float32)))
    assert 0.0 < drop_frac < 0.5, f"implausible drop fraction {drop_frac}"

    print("KERNEL_OK")
</pallas_src>

<mosaic_0001>
module attributes {stable_mosaic.version = 11 : i64} {
  func.func @_layernorm_kernel(%arg0: i32, %arg1: memref<16x32xf32, #tpu.memory_space<vmem>>, %arg2: memref<1x32xf32, #tpu.memory_space<vmem>>, %arg3: memref<1x32xf32, #tpu.memory_space<vmem>>, %arg4: memref<16x32xf32, #tpu.memory_space<vmem>>) attributes {dimension_semantics = [#tpu.dimension_semantics<parallel>], iteration_bounds = array<i64: 1>, scalar_prefetch = 0 : i64, scratch_operands = 0 : i64, tpu.core_type = #tpu.core_type<tc>, window_params = [{transform_indices = @transform_0, window_bounds = array<i64: 16, 32>}, {pipeline_mode = #tpu.pipeline_mode<synchronous>, transform_indices = @transform_1, window_bounds = array<i64: 1, 32>}, {pipeline_mode = #tpu.pipeline_mode<synchronous>, transform_indices = @transform_2, window_bounds = array<i64: 1, 32>}, {transform_indices = @transform_3, window_bounds = array<i64: 16, 32>}]} {
    %c0 = arith.constant 0 : index
    %c0_0 = arith.constant 0 : index
    %0 = vector.load %arg1[%c0, %c0_0] : memref<16x32xf32, #tpu.memory_space<vmem>>, vector<16x32xf32>
    %cst = arith.constant dense<0.000000e+00> : vector<16xf32>
    %1 = vector.multi_reduction <add>, %0, %cst [1] : vector<16x32xf32> to vector<16xf32>
    %2 = vector.shape_cast %1 : vector<16xf32> to vector<16x1xf32>
    %cst_1 = arith.constant 3.200000e+01 : f32
    %3 = vector.broadcast %cst_1 : f32 to vector<16x1xf32>
    %4 = arith.divf %2, %3 : vector<16x1xf32>
    %5 = vector.broadcast %4 : vector<16x1xf32> to vector<16x32xf32>
    %6 = arith.subf %0, %5 : vector<16x32xf32>
    %7 = arith.mulf %6, %6 : vector<16x32xf32>
    %cst_2 = arith.constant dense<0.000000e+00> : vector<16xf32>
    %8 = vector.multi_reduction <add>, %7, %cst_2 [1] : vector<16x32xf32> to vector<16xf32>
    %9 = vector.shape_cast %8 : vector<16xf32> to vector<16x1xf32>
    %cst_3 = arith.constant 3.100000e+01 : f32
    %10 = vector.broadcast %cst_3 : f32 to vector<16x1xf32>
    %11 = arith.divf %9, %10 : vector<16x1xf32>
    %12 = math.sqrt %11 : vector<16x1xf32>
    %c0_4 = arith.constant 0 : index
    %c0_5 = arith.constant 0 : index
    %13 = vector.load %arg2[%c0_4, %c0_5] : memref<1x32xf32, #tpu.memory_space<vmem>>, vector<1x32xf32>
    %14 = vector.broadcast %4 : vector<16x1xf32> to vector<16x32xf32>
    %15 = arith.subf %0, %14 : vector<16x32xf32>
    %16 = vector.broadcast %13 : vector<1x32xf32> to vector<16x32xf32>
    %17 = arith.mulf %16, %15 : vector<16x32xf32>
    %cst_6 = arith.constant 9.99999997E-7 : f32
    %18 = vector.broadcast %cst_6 : f32 to vector<16x1xf32>
    %19 = arith.addf %12, %18 : vector<16x1xf32>
    %20 = vector.broadcast %19 : vector<16x1xf32> to vector<16x32xf32>
    %21 = arith.divf %17, %20 : vector<16x32xf32>
    %c0_7 = arith.constant 0 : index
    %c0_8 = arith.constant 0 : index
    %22 = vector.load %arg3[%c0_7, %c0_8] : memref<1x32xf32, #tpu.memory_space<vmem>>, vector<1x32xf32>
    %23 = vector.broadcast %22 : vector<1x32xf32> to vector<16x32xf32>
    %24 = arith.addf %21, %23 : vector<16x32xf32>
    %c0_9 = arith.constant 0 : index
    %c0_10 = arith.constant 0 : index
    %25 = vector.load %arg4[%c0_9, %c0_10] : memref<16x32xf32, #tpu.memory_space<vmem>>, vector<16x32xf32>
    tpu.vector_store %arg4[%c0_9, %c0_10], %24 {strides = array<i32>} : memref<16x32xf32, #tpu.memory_space<vmem>>, vector<16x32xf32>,
    return
  }
  func.func @transform_0(%arg0: i32) -> (i32, i32) {
    %c0_i32 = arith.constant 0 : i32
    %c0_i32_0 = arith.constant 0 : i32
    return %arg0, %c0_i32 : i32, i32
  }
  func.func @transform_1(%arg0: i32) -> (i32, i32) {
    %c0_i32 = arith.constant 0 : i32
    %c0_i32_0 = arith.constant 0 : i32
    %c0_i32_1 = arith.constant 0 : i32
    return %c0_i32, %c0_i32_0 : i32, i32
  }
  func.func @transform_2(%arg0: i32) -> (i32, i32) {
    %c0_i32 = arith.constant 0 : i32
    %c0_i32_0 = arith.constant 0 : i32
    %c0_i32_1 = arith.constant 0 : i32
    return %c0_i32, %c0_i32_0 : i32, i32
  }
  func.func @transform_3(%arg0: i32) -> (i32, i32) {
    %c0_i32 = arith.constant 0 : i32
    %c0_i32_0 = arith.constant 0 : i32
    return %arg0, %c0_i32 : i32, i32
  }
}

module attributes {stable_mosaic.version = 11 : i64} {
  func.func @_residual_add_kernel(%arg0: i32, %arg1: memref<1x512xf32, #tpu.memory_space<vmem>>, %arg2: memref<1x512xf32, #tpu.memory_space<vmem>>, %arg3: memref<1x512xf32, #tpu.memory_space<vmem>>) attributes {dimension_semantics = [#tpu.dimension_semantics<parallel>], iteration_bounds = array<i64: 1>, scalar_prefetch = 0 : i64, scratch_operands = 0 : i64, tpu.core_type = #tpu.core_type<tc>, window_params = [{transform_indices = @transform_0, window_bounds = array<i64: 1, 512>}, {transform_indices = @transform_1, window_bounds = array<i64: 1, 512>}, {transform_indices = @transform_2, window_bounds = array<i64: 1, 512>}]} {
    %c0 = arith.constant 0 : index
    %c0_0 = arith.constant 0 : index
    %0 = vector.load %arg1[%c0, %c0_0] : memref<1x512xf32, #tpu.memory_space<vmem>>, vector<1x512xf32>
    %c0_1 = arith.constant 0 : index
    %c0_2 = arith.constant 0 : index
    %1 = vector.load %arg2[%c0_1, %c0_2] : memref<1x512xf32, #tpu.memory_space<vmem>>, vector<1x512xf32>
    %2 = arith.addf %0, %1 : vector<1x512xf32>
    %c0_3 = arith.constant 0 : index
    %c0_4 = arith.constant 0 : index
    %3 = vector.load %arg3[%c0_3, %c0_4] : memref<1x512xf32, #tpu.memory_space<vmem>>, vector<1x512xf32>
    tpu.vector_store %arg3[%c0_3, %c0_4], %2 {strides = array<i32>} : memref<1x512xf32, #tpu.memory_space<vmem>>, vector<1x512xf32>,
    return
  }
  func.func @transform_0(%arg0: i32) -> (i32, i32) {
    %c0_i32 = arith.constant 0 : i32
    %c0_i32_0 = arith.constant 0 : i32
    return %arg0, %c0_i32 : i32, i32
  }
  func.func @transform_1(%arg0: i32) -> (i32, i32) {
    %c0_i32 = arith.constant 0 : i32
    %c0_i32_0 = arith.constant 0 : i32
    return %arg0, %c0_i32 : i32, i32
  }
  func.func @transform_2(%arg0: i32) -> (i32, i32) {
    %c0_i32 = arith.constant 0 : i32
    %c0_i32_0 = arith.constant 0 : i32
    return %arg0, %c0_i32 : i32, i32
  }
}

</mosaic_0001>

<bundles_post_ra>
// kernel: _lambda_.3
= control target key start
LH: loop header
LB: loop body
LE: loop exit
PB: predicated region body
PF: predicated region fallthrough
CT: control target
= control target key end

     0   :  { %v14_v0 = vlaneseq  ;;  %s47_s0 = inlined_call_operand.vmem [shape: f32[1,512], index: 0, kind: input, shape index: {}, may-alias: {0,2}]   ;;  %s48_s1 = inlined_call_operand.vmem [shape: f32[1,512], index: 1, kind: input, shape index: {}]   ;;  %s49_s2 = inlined_call_operand.vmem [shape: f32[1,512], index: 2, kind: output, shape index: {}, may-alias: {0,2}]  }
   0x1   :  { %v11_v1 = vld [vmem:[%s47_s0] sm:$0xf] }
   0x2   :  { %v12_v2 = vld [vmem:[%s48_s1] sm:$0xf]  ;;  %vm16_vm0 = vcmp.lt.s32.totalorder %v14_v0, 512 }
   0x3   :  { %v13_v3 = vadd.f32 %v12_v2, %v11_v1 }
   0x5   :  { %18 = vst.msk [vmem:[%s49_s2] sm:$0xf] %vm16_vm0, %v13_v3 }

// kernel: _lambda_.2
= control target key start
LH: loop header
LB: loop body
LE: loop exit
PB: predicated region body
PF: predicated region fallthrough
CT: control target
= control target key end

     0   :  { %8 = vsyncpa [#allocation3], 0  ;;  %s187_s15 = smov [#allocation2]   ;;  %s188_s17 = smov 128   ;;  %s243_s0 = inlined_call_operand.hbm [shape: f32[16,32], index: 0, kind: input, shape index: {}]   ;;  %s244_s1 = inlined_call_operand.vmem [shape: f32[1,32], index: 1, kind: input, shape index: {}]   ;;  %s245_s2 = inlined_call_operand.vmem [shape: f32[1,32], index: 2, kind: input, shape index: {}]   ;;  %s246_s3 = inlined_call_operand.vmem [shape: f32[16,32], index: 3, kind: output, shape index: {}]  }
   0x1   :  { %s13_s14 = sshll.u32 %s243_s0, 4  ;;  %s15_s16 = sshll.u32 %s187_s15, 4  ;;  %s14_s14 = int_to_ptr.hbm [resolvable:$true] %s13_s14  ;;  %s16_s16 = int_to_ptr.vmem [resolvable:$true] %s15_s16 }
   0x2   :  { %s189_s18 = smov 8  }
   0x3   :  { %21 = dma.hbm_to_vmem [thread:$0]  %s14_s14, 256, %s16_s16, [#allocation3], %s188_s17, %s188_s17, %s189_s18  }
   0x4   :  { %185 = dma.done.wait [#allocation3], 256  }
   0x5   :  { %186 = vsyncadd [#allocation3], 4294967040  ;;  %vm32_vm0 = vcmask 261120   ;;  %v30_v0 = vld [vmem:[#allocation2] sm:$0xff]  ;;  %v31_v2 = vld [vmem:[#allocation2 + $0x8] sm:$0xff]  ;;  %v190_v4 = vmov 32.0  }
   0x6   :  { %v33_v1 = vsel %vm32_vm0, %v30_v0, 0.0  ;;  %v36_v3 = vsel %vm32_vm0, %v31_v2, 0.0  ;;  %149 = vrcp.f32 %v190_v4  ;;  %v191_v21 = vmov 31.0   ;;  %v147_v58 = vld [vmem:[%s244_s1] ss:$0 sm:$0xff] }
   0x7   :  { %34 = vadd.xlane.f32.xlu0 %v33_v1  ;;  %151 = vrcp.f32 %v191_v21  ;;  %v148_v1 = vld [vmem:[%s245_s2] ss:$0 sm:$0xff] }
   0xc   :  { %v150_v5 = vpop.eup %149 }
   0xd   :  { %v40_v6 = vmul.f32 32.0, %v150_v5  ;;  %vm44_vm1 = vweird.f32 %v150_v5  ;;  %v152_v22 = vpop.eup %151 }
   0xe   :  { %v59_v23 = vmul.f32 31.0, %v152_v22  ;;  %vm63_vm2 = vweird.f32 %v152_v22 }
   0xf   :  { %37 = vadd.xlane.f32.xlu0 %v36_v3  ;;  %v41_v7 = vsub.f32 1.0, %v40_v6 }
  0x10   :  { %v60_v24 = vsub.f32 1.0, %v59_v23 }
  0x11   :  { %v42_v8 = vmul.f32 %v150_v5, %v41_v7 }
  0x12   :  { %v61_v25 = vmul.f32 %v152_v22, %v60_v24 }
  0x13   :  { %v43_v9 = vadd.f32 %v150_v5, %v42_v8 }
  0x14   :  { %v62_v26 = vadd.f32 %v152_v22, %v61_v25 }
  0x15   :  { %v45_v10 = vsel %vm44_vm1, %v150_v5, %v43_v9 }
  0x16   :  { %v64_v27 = vsel %vm63_vm2, %v152_v22, %v62_v26 }
  0x7a   :  { %v35_v11 = vpop.xlane.xlu0 %34 }
  0x7b   :  { %v46_v12 = vmul.f32 %v45_v10, %v35_v11 }
  0x7d   :  { %v217_v13 = vsub.f32 %v30_v0, %v46_v12 }
  0x7f   :  { %v50_v14 = vmul.f32 %v217_v13, %v217_v13  ;;  %v95_v0 = vmul.f32 %v147_v58, %v217_v13 }
  0x81   :  { %v52_v15 = vsel %vm32_vm0, %v50_v14, 0.0 }
  0x82   :  { %53 = vadd.xlane.f32.xlu1 %v52_v15  ;;  %v38_v16 = vpop.xlane.xlu0 %37 }
  0x83   :  { %v47_v17 = vmul.f32 %v45_v10, %v38_v16 }
  0x85   :  { %v222_v18 = vsub.f32 %v31_v2, %v47_v17 }
  0x87   :  { %v51_v19 = vmul.f32 %v222_v18, %v222_v18  ;;  %v96_v13 = vmul.f32 %v147_v58, %v222_v18 }
  0x89   :  { %v55_v20 = vsel %vm32_vm0, %v51_v19, 0.0 }
  0x8a   :  { %56 = vadd.xlane.f32.xlu1 %v55_v20 }
  0xf5   :  { %v54_v28 = vpop.xlane.xlu1 %53 }
  0xf6   :  { %v65_v29 = vmul.f32 %v64_v27, %v54_v28 }
  0xf8   :  { %153 = vrsqrt.f32 %v65_v29  ;;  %vm74_vm3 = vcmp.eq.f32.partialorder %v65_v29, inf  ;;  %v77_v42 = vand.u32 2147483648, %v65_v29  ;;  %vm76_vm4 = vcmp.eq.f32.partialorder %v65_v29, 0.0 }
  0xfd   :  { %v57_v30 = vpop.xlane.xlu1 %56 }
  0xfe   :  { %v154_v31 = vpop.eup %153  ;;  %v66_v32 = vmul.f32 %v64_v27, %v57_v30 }
  0xff   :  { %v68_v33 = vmul.f32 %v154_v31, %v65_v29 }
 0x100   :  { %155 = vrsqrt.f32 %v66_v32  ;;  %vm86_vm5 = vcmp.eq.f32.partialorder %v66_v32, inf  ;;  %v89_v50 = vand.u32 2147483648, %v66_v32  ;;  %vm88_vm6 = vcmp.eq.f32.partialorder %v66_v32, 0.0 }
 0x101   :  { %v69_v34 = vmul.f32 %v154_v31, %v68_v33 }
 0x103   :  { %v70_v35 = vmul.f32 0.5, %v69_v34 }
 0x105   :  { %v71_v36 = vsub.f32 1.5, %v70_v35 }
 0x106   :  { %v156_v37 = vpop.eup %155 }
 0x107   :  { %v72_v38 = vmul.f32 %v154_v31, %v71_v36  ;;  %v80_v39 = vmul.f32 %v156_v37, %v66_v32 }
 0x109   :  { %v73_v40 = vmul.f32 %v72_v38, %v65_v29  ;;  %v81_v41 = vmul.f32 %v156_v37, %v80_v39 }
 0x10b   :  { %v75_v43 = vsel %vm74_vm3, %v65_v29, %v73_v40  ;;  %v82_v44 = vmul.f32 0.5, %v81_v41 }
 0x10c   :  { %v78_v45 = vsel %vm76_vm4, %v77_v42, %v75_v43 }
 0x10d   :  { %v97_v46 = vadd.f32 1e-06, %v78_v45  ;;  %v83_v47 = vsub.f32 1.5, %v82_v44 }
 0x10f   :  { %157 = vrcp.f32 %v97_v46  ;;  %v84_v48 = vmul.f32 %v156_v37, %v83_v47  ;;  %v110_v57 = vand.u32 2147483648, %v97_v46  ;;  %v108_v60 = vand.u32 2147483647, %v97_v46 }
 0x110   :  { %vm104_vm8 = vweird.f32 %v97_v46 }
 0x111   :  { %v85_v49 = vmul.f32 %v84_v48, %v66_v32  ;;  %v111_v62 = vor.u32 1.1754944e-38, %v110_v57  ;;  %vm109_vm10 = vcmp.eq.f32.partialorder %v108_v60, 8.507059e+37 }
 0x113   :  { %v87_v51 = vsel %vm86_vm5, %v66_v32, %v85_v49 }
 0x114   :  { %v90_v53 = vsel %vm88_vm6, %v89_v50, %v87_v51 }
 0x115   :  { %v158_v52 = vpop.eup %157  ;;  %v98_v55 = vadd.f32 1e-06, %v90_v53 }
 0x116   :  { %v100_v54 = vmul.f32 %v158_v52, %v97_v46  ;;  %vm105_vm7 = vweird.f32 %v158_v52 }
 0x117   :  { %159 = vrcp.f32 %v98_v55  ;;  %vm106_vm9 = vmor %vm104_vm8, %vm105_vm7  ;;  %v125_v8 = vand.u32 2147483648, %v98_v55  ;;  %v123_v10 = vand.u32 2147483647, %v98_v55  ;;  %vm119_vm12 = vweird.f32 %v98_v55 }
 0x118   :  { %v101_v56 = vsub.f32 1.0, %v100_v54 }
 0x119   :  { %v126_v12 = vor.u32 1.1754944e-38, %v125_v8  ;;  %vm124_vm14 = vcmp.eq.f32.partialorder %v123_v10, 8.507059e+37 }
 0x11a   :  { %v102_v59 = vmul.f32 %v158_v52, %v101_v56 }
 0x11c   :  { %v103_v61 = vadd.f32 %v158_v52, %v102_v59 }
 0x11d   :  { %v160_v63 = vpop.eup %159 }
 0x11e   :  { %v107_v2 = vsel %vm106_vm9, %v158_v52, %v103_v61  ;;  %v115_v4 = vmul.f32 %v160_v63, %v98_v55  ;;  %vm120_vm11 = vweird.f32 %v160_v63 }
 0x11f   :  { %v112_v3 = vsel %vm109_vm10, %v111_v62, %v107_v2  ;;  %vm121_vm13 = vmor %vm119_vm12, %vm120_vm11 }
 0x120   :  { %v113_v5 = vmul.f32 %v112_v3, %v95_v0  ;;  %v116_v6 = vsub.f32 1.0, %v115_v4 }
 0x122   :  { %v133_v7 = vadd.f32 %v148_v1, %v113_v5  ;;  %v117_v9 = vmul.f32 %v160_v63, %v116_v6 }
 0x124   :  { %135 = vst.msk [vmem:[%s246_s3] sm:$0xff] %vm32_vm0, %v133_v7  ;;  %v118_v11 = vadd.f32 %v160_v63, %v117_v9 }
 0x126   :  { %v122_v14 = vsel %vm121_vm13, %v160_v63, %v118_v11 }
 0x127   :  { %v127_v15 = vsel %vm124_vm14, %v126_v12, %v122_v14 }
 0x128   :  { %v128_v16 = vmul.f32 %v127_v15, %v96_v13 }
 0x12a   :  { %v134_v17 = vadd.f32 %v148_v1, %v128_v16 }
 0x12c   :  { %136 = vst.msk [vmem:[%s246_s3 + $0x8] sm:$0xff] %vm32_vm0, %v134_v17 }
 0x12d   :  { %141 = vsyncpa [#allocation3], 1 }

</bundles_post_ra>
